<compile_context>
chip_gen: v6e
topology: v6e:2x2x1
jax: 0.10.0
libtpu: 0.0.40
codegen_flags: <defaults>
</compile_context>

<pallas_src>
import jax
import jax.numpy as jnp
from jax.experimental import pallas as pl
from jax.experimental.pallas import tpu as pltpu

STATE_DIM = 10
HIDDEN = 128


def _critic_kernel(x_ref, w1_ref, w2_ref, b2_ref, o_ref):
    # x_ref : (STATE_DIM + 1, TB) -- batch on lanes; last row is constant 1.0
    # w1_ref: (HIDDEN, STATE_DIM + 1) -- b1 folded in as the last column
    # w2_ref: (HIDDEN, 1); b2_ref: (1, 1) scalar in SMEM
    # o_ref : (1, TB) lane-dense output slab

    # Layer 1 on the MXU; the bias is part of the matmul (ones row x b1 column).
    hT = jnp.dot(w1_ref[...], x_ref[...], preferred_element_type=jnp.float32)
    hT = jnp.maximum(hT, 0.0)                                     # ReLU (f32)

    # Layer 2 (N = 1): VPU multiply + sublane reduce keeps the MXU push/pop
    # slot free for layer 1 (profile-gated review note: keep this path).
    v = jnp.sum(hT * w2_ref[...], axis=0, keepdims=True)          # (1, TB)
    o_ref[...] = (v + b2_ref[0, 0]).astype(o_ref.dtype)


def critic_forward(x, w1, b1, w2, b2, *, block_b=8192,
                   use_core_parallel=False, allow_x_input_fusion=False):
    """x: (B, STATE_DIM) f32; params in PyTorch layout. Returns (B, 1)."""
    B = x.shape[0]
    assert x.shape[1] == STATE_DIM

    # Batch tile: always a multiple of 128 (lane width); small batches stay
    # single-step. 8192 lanes keeps the (HIDDEN, TB) f32 intermediates plus
    # double-buffered I/O well under the 32 MiB scoped-VMEM limit below on
    # v5e / v6e / v7x while amortizing per-grid-step overhead (~90%+).
    block_b = max(128, (int(block_b) // 128) * 128)
    TB = min(block_b, pl.cdiv(B, 128) * 128)
    grid = (pl.cdiv(B, TB),)            # ragged last block handled by masking

    # Layout plumbing (one fused XLA copy; no separate pad pass, no output
    # slice): batch -> lane axis, constant ones row for the bias fold.
    xT = jnp.transpose(x)                                          # (STATE_DIM, B)
    x_op = jnp.concatenate([xT, jnp.ones((1, B), x.dtype)], axis=0)  # (STATE_DIM+1, B)
    w1_aug = jnp.concatenate(
        [w1.astype(jnp.float32), b1.reshape(HIDDEN, 1).astype(jnp.float32)],
        axis=1)                                                    # (HIDDEN, STATE_DIM+1)
    w2c = w2.reshape(HIDDEN, 1).astype(jnp.float32)                # PyTorch W2 is (1, HIDDEN)
    b2c = b2.reshape(1, 1).astype(jnp.float32)                     # scalar -> SMEM

    dims = (pltpu.CORE_PARALLEL if use_core_parallel else "parallel",)
    fusion = [True, False, False, False] if allow_x_input_fusion else None

    out = pl.pallas_call(
        _critic_kernel,
        out_shape=jax.ShapeDtypeStruct((1, B), x.dtype),
        grid=grid,
        in_specs=[
            pl.BlockSpec((STATE_DIM + 1, TB), lambda i: (0, i)),      # x tile (pipelined)
            pl.BlockSpec((HIDDEN, STATE_DIM + 1), lambda i: (0, 0)),  # W1|b1 resident
            pl.BlockSpec((HIDDEN, 1), lambda i: (0, 0)),              # W2 resident
            pl.BlockSpec(memory_space=pltpu.MemorySpace.SMEM),        # b2 scalar
        ],
        out_specs=pl.BlockSpec((1, TB), lambda i: (0, i)),            # lane-dense output
        compiler_params=pltpu.CompilerParams(
            dimension_semantics=dims,
            vmem_limit_bytes=32 * 1024 * 1024,
            allow_input_fusion=fusion,
        ),
    )(x_op, w1_aug, w2c, b2c)

    # (1, B) lane-dense slab -> (B, 1) like the PyTorch module (tiny reshape).
    return out.reshape(B, 1)


def init_params(key):
    # PyTorch nn.Linear default init: U(-1/sqrt(fan_in), 1/sqrt(fan_in)),
    # weights in PyTorch layout (out_features, in_features).
    k1, k2, k3, k4 = jax.random.split(key, 4)
    bound1 = 1.0 / jnp.sqrt(jnp.float32(STATE_DIM))
    bound2 = 1.0 / jnp.sqrt(jnp.float32(HIDDEN))
    w1 = jax.random.uniform(k1, (HIDDEN, STATE_DIM), jnp.float32, -bound1, bound1)
    b1 = jax.random.uniform(k2, (HIDDEN,), jnp.float32, -bound1, bound1)
    w2 = jax.random.uniform(k3, (1, HIDDEN), jnp.float32, -bound2, bound2)
    b2 = jax.random.uniform(k4, (1,), jnp.float32, -bound2, bound2)
    return w1, b1, w2, b2


def reference_forward(x, w1, b1, w2, b2):
    h = jnp.maximum(x @ w1.T + b1, 0.0)
    return h @ w2.T + b2


if __name__ == "__main__":
    key = jax.random.PRNGKey(0)
    kx, kx2, kp = jax.random.split(key, 3)
    w1, b1, w2, b2 = init_params(kp)

    # Small batch (typical Critic usage) -> single partial lane block.
    batch = 8
    x = jax.random.normal(kx, (batch, STATE_DIM), jnp.float32)
    out = jax.block_until_ready(critic_forward(x, w1, b1, w2, b2))
    ref = reference_forward(x, w1, b1, w2, b2)
    assert out.shape == (batch, 1)
    assert jnp.allclose(out, ref, atol=1e-4, rtol=1e-5)

    # Non-multiple-of-128 batch: exercises the masked ragged-edge store path.
    batch2 = 200
    x2 = jax.random.normal(kx2, (batch2, STATE_DIM), jnp.float32)
    out2 = jax.block_until_ready(critic_forward(x2, w1, b1, w2, b2))
    ref2 = reference_forward(x2, w1, b1, w2, b2)
    assert out2.shape == (batch2, 1)
    assert jnp.allclose(out2, ref2, atol=1e-4, rtol=1e-5)

    print("KERNEL_OK")
</pallas_src>

<mosaic_0001>
module attributes {stable_mosaic.version = 11 : i64} {
  func.func @_critic_kernel(%arg0: i32, %arg1: memref<11x128xf32, #tpu.memory_space<vmem>>, %arg2: memref<128x11xf32, #tpu.memory_space<vmem>>, %arg3: memref<128x1xf32, #tpu.memory_space<vmem>>, %arg4: memref<1x1xf32, #tpu.memory_space<smem>>, %arg5: memref<1x128xf32, #tpu.memory_space<vmem>>) attributes {dimension_semantics = [#tpu.dimension_semantics<parallel>], iteration_bounds = array<i64: 1>, scalar_prefetch = 0 : i64, scratch_operands = 0 : i64, tpu.core_type = #tpu.core_type<tc>, window_params = [{transform_indices = @transform_0, window_bounds = array<i64: 11, 128>}, {pipeline_mode = #tpu.pipeline_mode<synchronous>, transform_indices = @transform_1, window_bounds = array<i64: 128, 11>}, {pipeline_mode = #tpu.pipeline_mode<synchronous>, transform_indices = @transform_2, window_bounds = array<i64: 128, 1>}, {transform_indices = @transform_3, window_bounds = array<i64: 1, 1>}, {transform_indices = @transform_4, window_bounds = array<i64: 1, 128>}]} {
    %c0 = arith.constant 0 : index
    %c0_0 = arith.constant 0 : index
    %0 = vector.load %arg2[%c0, %c0_0] : memref<128x11xf32, #tpu.memory_space<vmem>>, vector<128x11xf32>
    %c0_1 = arith.constant 0 : index
    %c0_2 = arith.constant 0 : index
    %1 = vector.load %arg1[%c0_1, %c0_2] : memref<11x128xf32, #tpu.memory_space<vmem>>, vector<11x128xf32>
    %cst = arith.constant dense<0.000000e+00> : vector<128x128xf32>
    %2 = tpu.matmul %0, %1, %cst {dimension_numbers = #tpu.dot_dimension_numbers<[1], [0], [0], [1], [0, 0, 1, 1], [], []>} : vector<128x11xf32>, vector<11x128xf32>, vector<128x128xf32> -> vector<128x128xf32>
    %cst_3 = arith.constant 0.000000e+00 : f32
    %3 = vector.broadcast %cst_3 : f32 to vector<128x128xf32>
    %4 = arith.maximumf %2, %3 : vector<128x128xf32>
    %c0_4 = arith.constant 0 : index
    %c0_5 = arith.constant 0 : index
    %5 = vector.load %arg3[%c0_4, %c0_5] : memref<128x1xf32, #tpu.memory_space<vmem>>, vector<128x1xf32>
    %6 = vector.broadcast %5 : vector<128x1xf32> to vector<128x128xf32>
    %7 = arith.mulf %4, %6 : vector<128x128xf32>
    %cst_6 = arith.constant dense<0.000000e+00> : vector<128xf32>
    %8 = vector.multi_reduction <add>, %7, %cst_6 [0] : vector<128x128xf32> to vector<128xf32>
    %9 = vector.shape_cast %8 : vector<128xf32> to vector<1x128xf32>
    %c0_7 = arith.constant 0 : index
    %c0_8 = arith.constant 0 : index
    %10 = memref.load %arg4[%c0_7, %c0_8] : memref<1x1xf32, #tpu.memory_space<smem>>
    %11 = vector.broadcast %10 : f32 to vector<1x128xf32>
    %12 = arith.addf %9, %11 : vector<1x128xf32>
    %c0_9 = arith.constant 0 : index
    %c0_10 = arith.constant 0 : index
    %13 = vector.load %arg5[%c0_9, %c0_10] : memref<1x128xf32, #tpu.memory_space<vmem>>, vector<1x128xf32>
    tpu.vector_store %arg5[%c0_9, %c0_10], %12 {strides = array<i32>} : memref<1x128xf32, #tpu.memory_space<vmem>>, vector<1x128xf32>,
    return
  }
  func.func @transform_0(%arg0: i32) -> (i32, i32) {
    %c0_i32 = arith.constant 0 : i32
    %c0_i32_0 = arith.constant 0 : i32
    return %c0_i32, %arg0 : i32, i32
  }
  func.func @transform_1(%arg0: i32) -> (i32, i32) {
    %c0_i32 = arith.constant 0 : i32
    %c0_i32_0 = arith.constant 0 : i32
    %c0_i32_1 = arith.constant 0 : i32
    return %c0_i32, %c0_i32_0 : i32, i32
  }
  func.func @transform_2(%arg0: i32) -> (i32, i32) {
    %c0_i32 = arith.constant 0 : i32
    %c0_i32_0 = arith.constant 0 : i32
    %c0_i32_1 = arith.constant 0 : i32
    return %c0_i32, %c0_i32_0 : i32, i32
  }
  func.func @transform_3(%arg0: i32) -> (i32, i32) {
    %c0_i32 = arith.constant 0 : i32
    %c0_i32_0 = arith.constant 0 : i32
    %c0_i32_1 = arith.constant 0 : i32
    return %c0_i32, %c0_i32_0 : i32, i32
  }
  func.func @transform_4(%arg0: i32) -> (i32, i32) {
    %c0_i32 = arith.constant 0 : i32
    %c0_i32_0 = arith.constant 0 : i32
    return %c0_i32, %arg0 : i32, i32
  }
}

</mosaic_0001>

<bundles_post_ra>
// kernel: tpu_custom_call.1
= control target key start
LH: loop header
LB: loop body
LE: loop exit
PB: predicated region body
PF: predicated region fallthrough
CT: control target
= control target key end

     0   :  { %vm86_vm0 = vcmask 1042432   ;;  %vm37_vm1 = vcmask 89088   ;;  %v495_v14 = vmov 0   ;;  %s646_s0 = inlined_call_operand.vmem [shape: f32[11,8], index: 0, kind: input, shape index: {}]   ;;  %s647_s1 = inlined_call_operand.vmem [shape: f32[128,11], index: 1, kind: input, shape index: {}]   ;;  %s648_s2 = inlined_call_operand.vmem [shape: f32[128,1], index: 2, kind: input, shape index: {}]   ;;  %s649_s3 = inlined_call_operand.<no memory space> [shape: f32[1,1], index: 3, kind: input, shape index: {}]   ;;  %s650_s4 = inlined_call_operand.hbm [shape: f32[1,8], index: 4, kind: output, shape index: {}]  }
   0x1   :  { %v36_v0 = vld [vmem:[%s646_s0 + $0x8] sm:$0x7]  ;;  %v35_v1 = vld [vmem:[%s646_s0] sm:$0xff]  ;;  %v21_v6 = vld [vmem:[%s647_s1 + $0x10] sm:$0xff]  ;;  %471 = vset.pattern.permute.xlu0 %v495_v14  ;;  %472 = vset.pattern.permute.xlu1 %v495_v14 }
   0x2   :  { %437 = vmatprep.subr.msk.mxu0 %vm86_vm0, %v36_v0  ;;  %465 = vmatprep.subr.msk.mxu1 %vm86_vm0, %v36_v0  ;;  %v19_v2 = vld [vmem:[%s647_s1] sm:$0xff]  ;;  %v20_v4 = vld [vmem:[%s647_s1 + $0x8] sm:$0xff]  ;;  %v29_v7 = vld [vmem:[%s647_s1 + $0x50] sm:$0xff] }
   0x3   :  { %438 = vmatpush3.msk.msra.mxu0 %vm86_vm0, %v36_v0  ;;  %467 = vmatpush3.msk.msra.mxu1 %vm86_vm0, %v36_v0  ;;  %v27_v3 = vld [vmem:[%s647_s1 + $0x40] sm:$0xff]  ;;  %v28_v5 = vld [vmem:[%s647_s1 + $0x48] sm:$0xff]  ;;  %v253_v9 = vld [vmem:[%s648_s2 + $0x10] sm:$0xff] }
   0x4   :  { %439 = vmatprep.subr.mxu0 %v35_v1  ;;  %466 = vmatprep.subr.mxu1 %v35_v1  ;;  %v251_v8 = vld [vmem:[%s648_s2] sm:$0xff]  ;;  %v22_v10 = vld [vmem:[%s647_s1 + $0x18] sm:$0xff]  ;;  %v252_v15 = vld [vmem:[%s648_s2 + $0x8] sm:$0xff] }
   0x5   :  { %440 = vmatpush3.msra.mxu0 %v35_v1  ;;  %468 = vmatpush3.msra.mxu1 %v35_v1  ;;  %v30_v11 = vld [vmem:[%s647_s1 + $0x58] sm:$0xff]  ;;  %v23_v12 = vld [vmem:[%s647_s1 + $0x20] sm:$0xff]  ;;  %v24_v17 = vld [vmem:[%s647_s1 + $0x28] sm:$0xff] }
   0x6   :  { %441 = vmatprep.mubr.msk.f32.mxu0 %vm37_vm1, %v19_v2  ;;  %453 = vmatprep.mubr.msk.f32.mxu1 %vm37_vm1, %v27_v3  ;;  %v31_v13 = vld [vmem:[%s647_s1 + $0x60] sm:$0xff]  ;;  %v254_v16 = vld [vmem:[%s648_s2 + $0x18] sm:$0xff]  ;;  %v32_v18 = vld [vmem:[%s647_s1 + $0x68] sm:$0xff] }
   0x7   :  { %442 = vmatmul.mubr.msk.f32.vlgmr.msra.gmra.mxu0 %vm37_vm1, %v20_v4  ;;  %454 = vmatmul.mubr.msk.f32.vlgmr.msra.gmra.mxu1 %vm37_vm1, %v28_v5 }
   0x8   :  { %444 = vmatprep.mubr.msk.f32.mxu0 %vm37_vm1, %v21_v6  ;;  %456 = vmatprep.mubr.msk.f32.mxu1 %vm37_vm1, %v29_v7 }
   0x9   :  { %269 = vperm.xlu0 %471, %v251_v8   ;;  %279 = vperm.xlu1 %472, %v253_v9  }
   0xb   :  { %445 = vmatmul.mubr.msk.f32.gmra.mxu0 %vm37_vm1, %v22_v10  ;;  %457 = vmatmul.mubr.msk.f32.gmra.mxu1 %vm37_vm1, %v30_v11 }
   0xc   :  { %447 = vmatprep.mubr.msk.f32.mxu0 %vm37_vm1, %v23_v12  ;;  %459 = vmatprep.mubr.msk.f32.mxu1 %vm37_vm1, %v31_v13 }
   0xd   :  { %10 = vsyncpa [#allocation4], 0  ;;  %v25_v19 = vld [vmem:[%s647_s1 + $0x30] sm:$0xff]  ;;  %274 = vperm.xlu0 %471, %v252_v15   ;;  %284 = vperm.xlu1 %472, %v254_v16   ;;  %v255_v21 = vld [vmem:[%s648_s2 + $0x20] sm:$0xff]  ;;  %s496_s28 = smov [#allocation3]  }
   0xe   :  { %v33_v20 = vld [vmem:[%s647_s1 + $0x70] sm:$0xff]  ;;  %v256_v22 = vld [vmem:[%s648_s2 + $0x28] sm:$0xff]  ;;  %v26_v23 = vld [vmem:[%s647_s1 + $0x38] sm:$0xff]  ;;  %s394_s29 = sshll.u32 %s496_s28, 4  ;;  %s395_s29 = int_to_ptr.vmem [resolvable:$true] %s394_s29 }
   0xf   :  { %448 = vmatmul.mubr.msk.f32.gmra.mxu0 %vm37_vm1, %v24_v17  ;;  %460 = vmatmul.mubr.msk.f32.gmra.mxu1 %vm37_vm1, %v32_v18  ;;  %v34_v24 = vld [vmem:[%s647_s1 + $0x78] sm:$0xff]  ;;  %v257_v25 = vld [vmem:[%s648_s2 + $0x30] sm:$0xff]  ;;  %v259_v27 = vld [vmem:[%s648_s2 + $0x40] sm:$0xff]  ;;  %s473_s30 = scalar_lea.vmem %s395_s29, 16  ;;  %s477_s5 = scalar_lea.vmem %s395_s29, 32 }
  0x10   :  { %450 = vmatprep.mubr.msk.f32.mxu0 %vm37_vm1, %v25_v19  ;;  %462 = vmatprep.mubr.msk.f32.mxu1 %vm37_vm1, %v33_v20  ;;  %v258_v26 = vld [vmem:[%s648_s2 + $0x38] sm:$0xff]  ;;  %v260_v28 = vld [vmem:[%s648_s2 + $0x48] sm:$0xff]  ;;  %v261_v29 = vld [vmem:[%s648_s2 + $0x50] sm:$0xff]  ;;  %p474_p0 = scmp.ne.s32.totalorder %s395_s29, %s473_s30  ;;  %p478_p1 = scmp.lt.s32.totalorder %s395_s29, %s395_s29 }
  0x11   :  { %289 = vperm.xlu0 %471, %v255_v21   ;;  %294 = vperm.xlu1 %472, %v256_v22   ;;  %v262_v30 = vld [vmem:[%s648_s2 + $0x58] sm:$0xff]  ;;  %v263_v31 = vld [vmem:[%s648_s2 + $0x60] sm:$0xff]  ;;  %v264_v32 = vld [vmem:[%s648_s2 + $0x68] sm:$0xff]  ;;  %p479_p2 = scmp.lt.s32.totalorder %s477_s5, %s473_s30 }
  0x12   :  { %v265_v33 = vld [vmem:[%s648_s2 + $0x70] sm:$0xff]  ;;  %v266_v34 = vld [vmem:[%s648_s2 + $0x78] sm:$0xff] }
  0x13   :  { %451 = vmatmul.mubr.msk.f32.gmra.mxu0 %vm37_vm1, %v26_v23  ;;  %463 = vmatmul.mubr.msk.f32.gmra.mxu1 %vm37_vm1, %v34_v24  ;;  %p480_p3 = por %p479_p2, %p478_p1 }
  0x15   :  { %299 = vperm.xlu0 %471, %v257_v25   ;;  %304 = vperm.xlu1 %472, %v258_v26   ;;  %p481_p4 = pnand %p480_p3, %p474_p0 }
  0x19   :  { %309 = vperm.xlu0 %471, %v259_v27   ;;  %314 = vperm.xlu1 %472, %v260_v28  }
  0x1d   :  { %319 = vperm.xlu0 %471, %v261_v29   ;;  %324 = vperm.xlu1 %472, %v262_v30  }
  0x21   :  { %329 = vperm.xlu0 %471, %v263_v31   ;;  %334 = vperm.xlu1 %472, %v264_v32  }
  0x25   :  { %339 = vperm.xlu0 %471, %v265_v33   ;;  %344 = vperm.xlu1 %472, %v266_v34  }
  0x84   :  { %v270_v35 = vpop.permute.xlu0 %269  ;;  %v280_v36 = vpop.permute.xlu1 %279 }
  0x88   :  { %v275_v37 = vpop.permute.xlu0 %274  ;;  %v285_v38 = vpop.permute.xlu1 %284 }
  0x8c   :  { %v290_v41 = vpop.permute.xlu0 %289  ;;  %v295_v44 = vpop.permute.xlu1 %294 }
  0x90   :  { %v300_v51 = vpop.permute.xlu0 %299  ;;  %v305_v56 = vpop.permute.xlu1 %304 }
  0x94   :  { %v310_v2 = vpop.permute.xlu0 %309  ;;  %v315_v11 = vpop.permute.xlu1 %314 }
  0x98   :  { %v320_v19 = vpop.permute.xlu0 %319  ;;  %v325_v23 = vpop.permute.xlu1 %324 }
  0x9c   :  { %v330_v31 = vpop.permute.xlu0 %329 }
  0xc7   :  { %v443_v39 = vpop.f32.mrf.mxu0  ;;  %v455_v40 = vpop.f32.mrf.mxu1 }
  0xc8   :  { %v236_v45 = vmax.f32 %v443_v39, 0.0  ;;  %v244_v16 = vmax.f32 %v455_v40, 0.0 }
  0xc9   :  { %v156_v42 = vpop.f32.mrf.mxu0  ;;  %v196_v43 = vpop.f32.mrf.mxu1 }
  0xca   :  { %v235_v46 = vmax.f32 %v156_v42, 0.0  ;;  %v348_v52 = vmul.f32 %v275_v37, %v236_v45  ;;  %v243_v12 = vmax.f32 %v196_v43, 0.0  ;;  %v356_v25 = vmul.f32 %v315_v11, %v244_v16  ;;  %v340_v43 = vpop.permute.xlu0 %339 }
  0xcb   :  { %v446_v47 = vpop.f32.mrf.mxu0  ;;  %v458_v49 = vpop.f32.mrf.mxu1 }
  0xcc   :  { %v347_v48 = vmul.f32 %v270_v35, %v235_v46  ;;  %v238_v53 = vmax.f32 %v446_v47, 0.0  ;;  %v355_v20 = vmul.f32 %v310_v2, %v243_v12  ;;  %v246_v26 = vmax.f32 %v458_v49, 0.0 }
  0xcd   :  { %v166_v50 = vpop.f32.mrf.mxu0  ;;  %v206_v59 = vpop.f32.mrf.mxu1 }
  0xce   :  { %v237_v54 = vmax.f32 %v166_v50, 0.0  ;;  %v363_v57 = vadd.f32 %v348_v52, %v347_v48  ;;  %v350_v61 = vmul.f32 %v285_v38, %v238_v53  ;;  %v245_v21 = vmax.f32 %v206_v59, 0.0 }
  0xcf   :  { %v449_v55 = vpop.f32.mrf.mxu0  ;;  %v461_v5 = vpop.f32.mrf.mxu1  ;;  %v358_v33 = vmul.f32 %v325_v23, %v246_v26 }
  0xd0   :  { %v349_v58 = vmul.f32 %v280_v36, %v237_v54  ;;  %v240_v63 = vmax.f32 %v449_v55, 0.0  ;;  %v357_v28 = vmul.f32 %v320_v19, %v245_v21  ;;  %v248_v34 = vmax.f32 %v461_v5, 0.0  ;;  %v335_v36 = vpop.permute.xlu1 %334 }
  0xd1   :  { %v176_v60 = vpop.f32.mrf.mxu0  ;;  %v216_v15 = vpop.f32.mrf.mxu1  ;;  %v385_v55 = vstv %s649_s3 }
  0xd2   :  { %v364_v62 = vadd.f32 %v363_v57, %v349_v58  ;;  %v239_v0 = vmax.f32 %v176_v60, 0.0  ;;  %v352_v7 = vmul.f32 %v295_v44, %v240_v63  ;;  %v247_v29 = vmax.f32 %v216_v15, 0.0 }
  0xd3   :  { %v452_v1 = vpop.f32.mrf.mxu0  ;;  %v464_v24 = vpop.f32.mrf.mxu1  ;;  %v360_v40 = vmul.f32 %v335_v36, %v248_v34 }
  0xd4   :  { %v351_v3 = vmul.f32 %v290_v41, %v239_v0  ;;  %v365_v4 = vadd.f32 %v364_v62, %v350_v61  ;;  %v242_v9 = vmax.f32 %v452_v1, 0.0  ;;  %v359_v37 = vmul.f32 %v330_v31, %v247_v29  ;;  %v345_v46 = vpop.permute.xlu1 %344 }
  0xd5   :  { %v186_v6 = vpop.f32.mrf.mxu0  ;;  %v226_v32 = vpop.f32.mrf.mxu1  ;;  %v250_v41 = vmax.f32 %v464_v24, 0.0 }
  0xd6   :  { %v366_v8 = vadd.f32 %v365_v4, %v351_v3  ;;  %v241_v10 = vmax.f32 %v186_v6, 0.0  ;;  %v354_v17 = vmul.f32 %v305_v56, %v242_v9  ;;  %v249_v38 = vmax.f32 %v226_v32, 0.0 }
  0xd7   :  { %v362_v47 = vmul.f32 %v345_v46, %v250_v41 }
  0xd8   :  { %v353_v13 = vmul.f32 %v300_v51, %v241_v10  ;;  %v367_v14 = vadd.f32 %v366_v8, %v352_v7  ;;  %v361_v44 = vmul.f32 %v340_v43, %v249_v38 }
  0xda   :  { %v368_v18 = vadd.f32 %v367_v14, %v353_v13 }
  0xdc   :  { %v369_v22 = vadd.f32 %v368_v18, %v354_v17 }
  0xde   :  { %v370_v27 = vadd.f32 %v369_v22, %v355_v20 }
  0xe0   :  { %v371_v30 = vadd.f32 %v370_v27, %v356_v25 }
  0xe2   :  { %v372_v35 = vadd.f32 %v371_v30, %v357_v28 }
  0xe4   :  { %v373_v39 = vadd.f32 %v372_v35, %v358_v33 }
  0xe6   :  { %v374_v42 = vadd.f32 %v373_v39, %v359_v37 }
  0xe8   :  { %v375_v45 = vadd.f32 %v374_v42, %v360_v40 }
  0xea   :  { %v376_v48 = vadd.f32 %v375_v45, %v361_v44 }
  0xec   :  { %v377_v49 = vadd.f32 %v376_v48, %v362_v47 }
  0xee   :  { %v378_v50 = vrot.slane %v377_v49, 4 }
  0xf0   :  { %v379_v51 = vadd.f32 %v378_v50, %v377_v49 }
  0xf2   :  { %v380_v52 = vrot.slane %v379_v51, 2 }
  0xf4   :  { %v381_v53 = vadd.f32 %v380_v52, %v379_v51 }
  0xf6   :  { %v382_v54 = vrot.slane %v381_v53, 1 }
  0xf8   :  { %v383_v56 = vadd.f32 %v382_v54, %v381_v53 }
  0xfa   :  { %v386_v57 = vadd.f32 %v385_v55, %v383_v56 }
  0xfc   :  { %387 = vst [vmem:[#allocation3] sm:$0x1] %v386_v57 }
  0xfd   :  { %484 = shalt.err (!%p481_p4)
}
  0xfe   :  { %397 = dma.vmem_to_hbm [thread:$0]  %s395_s29, 16, %s650_s4, [#allocation4]  }
  0xff   :  { %493 = dma.done.wait [#allocation4], 16  }
 0x100   :  { %494 = vsyncadd [#allocation4], 4294967280 }
 0x101   :  { %401 = vsyncpa [#allocation4], 1 }

</bundles_post_ra>
